<compile_context>
chip_gen: v7x
topology: tpu7x:2x2x1
jax: 0.10.0
libtpu: 0.0.40
codegen_flags: <defaults>
</compile_context>

<pallas_src>
import jax
import jax.numpy as jnp
from jax import lax
from jax.experimental import pallas as pl
from jax.experimental.pallas import tpu as pltpu


def _basic_conv_kernel(x_ref, w_ref, b_ref, o_ref):
    # x_ref: (Nb, C_in, TS)   NCHW slab, spatial flattened onto lanes
    # w_ref: (C_out, C_in)    1x1 conv weight with BN scale already folded in
    # b_ref: (C_out, 1)       folded BN bias = beta - mean * scale  (f32)
    # o_ref: (Nb, C_out, TS)
    w = w_ref[...]
    bias = b_ref[...]
    nb = x_ref.shape[0]
    for b in range(nb):                                   # small static unroll
        y = lax.dot_general(w, x_ref[b],
                            dimension_numbers=(((1,), (0,)), ((), ())),
                            preferred_element_type=jnp.float32)   # (C_out, TS)
        y = y + bias
        # LeakyReLU(negative_slope=0.1), f32 epilogue; cast only at the store.
        o_ref[b] = jnp.where(y > 0, y, 0.1 * y).astype(o_ref.dtype)


def _sublane_padded(channels, itemsize):
    """Physical sublane footprint of a channel (second-to-last) axis."""
    mult = max(8, 32 // max(itemsize, 1))       # f32 -> 8, bf16 -> 16, int8 -> 32
    return pl.cdiv(channels, mult) * mult


def _largest_divisor_le(n, k):
    k = max(1, min(n, k))
    for d in range(k, 0, -1):
        if n % d == 0:
            return d
    return 1


def basic_conv_forward(x_nchw, conv_w, bn_gamma, bn_beta, bn_mean, bn_var,
                       eps=1e-5, out_dtype=None):
    """Forward of BasicConv(in_dim, out_dim) with defaults:
       kernel_size=1, padding=0, stride=1, dilation=1, act='lrelu', norm='BN',
       depthwise=False.  BN is applied in eval mode (running stats).

       out_dtype: dtype of the stored output (e.g. jnp.bfloat16 if the consumer
       accepts it); accumulation + epilogue stay f32 regardless.
    """
    N, C_in, H, W = x_nchw.shape
    C_out = conv_w.shape[0]
    HW = H * W
    x_dtype = x_nchw.dtype
    if out_dtype is None:
        out_dtype = x_dtype
    xbytes = jnp.dtype(x_dtype).itemsize
    obytes = jnp.dtype(out_dtype).itemsize

    # ---- Fold BN (eval mode) into the conv weight + a per-channel bias (f32) ----
    scale = (bn_gamma.astype(jnp.float32)
             / jnp.sqrt(bn_var.astype(jnp.float32) + eps))              # (C_out,)
    bias = bn_beta.astype(jnp.float32) - bn_mean.astype(jnp.float32) * scale
    # Weight is tiny; cast it to the input dtype (no activation cast in HBM).
    w_mat = (conv_w.reshape(C_out, C_in).astype(jnp.float32)
             * scale[:, None]).astype(x_dtype)                          # (C_out, C_in)
    bias2 = bias.reshape(C_out, 1)                                      # (C_out, 1) f32

    # ---- Generation-aware VMEM budget ----
    try:
        vmem_cap = int(pltpu.get_tpu_info().vmem_capacity_bytes)
    except Exception:
        vmem_cap = 128 * 1024 * 1024
    # <=48 MiB and <=75% of physical: headroom on v7x (64 MiB), big on v5e/v6e.
    vmem_limit = int(min(48 * 1024 * 1024, (vmem_cap * 3) // 4))
    budget = vmem_limit - 2 * 1024 * 1024       # weights / compiler scratch headroom

    # Double-buffered VMEM footprint per (batch elem, spatial column), including
    # sublane padding of the channel axis (C_in=4 f32 occupies 8 sublanes, etc.).
    cin_pad = _sublane_padded(C_in, xbytes)
    cout_pad = _sublane_padded(C_out, obytes)
    vmem_per_col = 2 * (cin_pad * xbytes + cout_pad * obytes)
    cols_budget = max(128, budget // max(vmem_per_col, 1))

    # Spatial tile: lane-dense multiple of 128, as large as the budget allows.
    hw_ceil = pl.cdiv(HW, 128) * 128
    ts = min(hw_ceil, (cols_budget // 128) * 128)
    ts = max(ts, 128)
    # Batch block fills the rest of the budget when H*W alone is small.
    nb = _largest_divisor_le(N, max(1, cols_budget // ts))

    # Keep >=2 grid programs where possible (v7x shards parallel axes over 2 TCs).
    if (N // nb) * pl.cdiv(HW, ts) < 2:
        if N > 1:
            nb = _largest_divisor_le(N, max(1, nb // 2))
        elif HW > 128:
            ts = max(128, pl.cdiv(pl.cdiv(HW, 2), 128) * 128)

    grid = (N // nb, pl.cdiv(HW, ts))

    # Free reshape (contiguous merge). NO pad / slice / astype HBM passes.
    x_flat = x_nchw.reshape(N, C_in, HW)

    out_flat = pl.pallas_call(
        _basic_conv_kernel,
        out_shape=jax.ShapeDtypeStruct((N, C_out, HW), out_dtype),
        grid_spec=pltpu.PrefetchScalarGridSpec(
            num_scalar_prefetch=0,
            grid=grid,
            in_specs=[
                pl.BlockSpec((nb, C_in, ts), lambda n, s: (n, 0, s)),
                pl.BlockSpec((C_out, C_in), lambda n, s: (0, 0)),
                pl.BlockSpec((C_out, 1), lambda n, s: (0, 0)),
            ],
            out_specs=pl.BlockSpec((nb, C_out, ts), lambda n, s: (n, 0, s)),
        ),
        compiler_params=pltpu.CompilerParams(
            dimension_semantics=("parallel", "parallel"),
            vmem_limit_bytes=vmem_limit),
        cost_estimate=pl.CostEstimate(
            flops=2 * N * HW * C_in * C_out,
            transcendentals=0,
            bytes_accessed=(N * HW * C_in * xbytes
                            + N * HW * C_out * obytes
                            + C_out * C_in * xbytes)),
    )(x_flat, w_mat, bias2)

    # Free reshape back to NCHW (channels never left dim 1 — no transpose).
    return out_flat.reshape(N, C_out, H, W)


def _reference(x_nchw, conv_w, bn_gamma, bn_beta, bn_mean, bn_var, eps=1e-5):
    # Plain-JAX reference of the same forward (sanity check), done in NCHW.
    N, C_in, H, W = x_nchw.shape
    C_out = conv_w.shape[0]
    w = conv_w.reshape(C_out, C_in)
    y = jnp.einsum('oc,nchw->nohw', w, x_nchw)
    scale = bn_gamma / jnp.sqrt(bn_var + eps)
    y = (y * scale[None, :, None, None]
         + (bn_beta - bn_mean * scale)[None, :, None, None])
    return jnp.where(y > 0, y, 0.1 * y)


if __name__ == "__main__":
    key = jax.random.PRNGKey(0)
    k_x, k_w, k_g, k_b, k_m, k_v = jax.random.split(key, 6)

    N, C_in, H, W = 2, 4, 16, 16
    C_out = 8

    x = jax.random.normal(k_x, (N, C_in, H, W), dtype=jnp.float32)

    # Deterministic synthetic parameters (shapes per nn.Conv2d / nn.BatchNorm2d).
    conv_w = jax.random.normal(k_w, (C_out, C_in, 1, 1), dtype=jnp.float32) * 0.1
    bn_gamma = 1.0 + 0.1 * jax.random.normal(k_g, (C_out,), dtype=jnp.float32)
    bn_beta = 0.1 * jax.random.normal(k_b, (C_out,), dtype=jnp.float32)
    bn_mean = 0.05 * jax.random.normal(k_m, (C_out,), dtype=jnp.float32)
    bn_var = jnp.abs(jax.random.normal(k_v, (C_out,), dtype=jnp.float32)) + 0.5

    out = basic_conv_forward(x, conv_w, bn_gamma, bn_beta, bn_mean, bn_var)
    out = jax.block_until_ready(out)

    ref = _reference(x, conv_w, bn_gamma, bn_beta, bn_mean, bn_var)
    assert out.shape == (N, C_out, H, W)
    assert jnp.allclose(out, ref, atol=1e-5, rtol=1e-5)

    print("KERNEL_OK")
</pallas_src>

<mosaic_0001>
module attributes {stable_mosaic.version = 11 : i64} {
  func.func @_basic_conv_kernel(%arg0: i32, %arg1: i32, %arg2: memref<1x4x256xf32, #tpu.memory_space<vmem>>, %arg3: memref<8x4xf32, #tpu.memory_space<vmem>>, %arg4: memref<8x1xf32, #tpu.memory_space<vmem>>, %arg5: memref<1x8x256xf32, #tpu.memory_space<vmem>>) attributes {dimension_semantics = [#tpu.dimension_semantics<parallel>, #tpu.dimension_semantics<parallel>], iteration_bounds = array<i64: 2, 1>, scalar_prefetch = 0 : i64, scratch_operands = 0 : i64, tpu.core_type = #tpu.core_type<tc>, window_params = [{transform_indices = @transform_0, window_bounds = array<i64: 1, 4, 256>}, {pipeline_mode = #tpu.pipeline_mode<synchronous>, transform_indices = @transform_1, window_bounds = array<i64: 8, 4>}, {pipeline_mode = #tpu.pipeline_mode<synchronous>, transform_indices = @transform_2, window_bounds = array<i64: 8, 1>}, {transform_indices = @transform_3, window_bounds = array<i64: 1, 8, 256>}]} {
    %c0 = arith.constant 0 : index
    %c0_0 = arith.constant 0 : index
    %0 = vector.load %arg3[%c0, %c0_0] : memref<8x4xf32, #tpu.memory_space<vmem>>, vector<8x4xf32>
    %c0_1 = arith.constant 0 : index
    %c0_2 = arith.constant 0 : index
    %1 = vector.load %arg4[%c0_1, %c0_2] : memref<8x1xf32, #tpu.memory_space<vmem>>, vector<8x1xf32>
    %c0_3 = arith.constant 0 : index
    %c0_4 = arith.constant 0 : index
    %c0_5 = arith.constant 0 : index
    %2 = vector.load %arg2[%c0_3, %c0_4, %c0_5] : memref<1x4x256xf32, #tpu.memory_space<vmem>>, vector<1x4x256xf32>
    %3 = vector.shape_cast %2 : vector<1x4x256xf32> to vector<4x256xf32>
    %cst = arith.constant dense<0.000000e+00> : vector<8x256xf32>
    %4 = tpu.matmul %0, %3, %cst {dimension_numbers = #tpu.dot_dimension_numbers<[1], [0], [0], [1], [0, 0, 1, 1], [], []>} : vector<8x4xf32>, vector<4x256xf32>, vector<8x256xf32> -> vector<8x256xf32>
    %5 = vector.broadcast %1 : vector<8x1xf32> to vector<8x256xf32>
    %6 = arith.addf %4, %5 : vector<8x256xf32>
    %cst_6 = arith.constant 0.000000e+00 : f32
    %7 = vector.broadcast %cst_6 : f32 to vector<8x256xf32>
    %8 = arith.cmpf ogt, %6, %7 : vector<8x256xf32>
    %cst_7 = arith.constant 1.000000e-01 : f32
    %9 = vector.broadcast %cst_7 : f32 to vector<8x256xf32>
    %10 = arith.mulf %9, %6 : vector<8x256xf32>
    %11 = arith.select %8, %6, %10 : vector<8x256xi1>, vector<8x256xf32>
    %c0_8 = arith.constant 0 : index
    %c0_9 = arith.constant 0 : index
    %c0_10 = arith.constant 0 : index
    %12 = vector.load %arg5[%c0_8, %c0_9, %c0_10] : memref<1x8x256xf32, #tpu.memory_space<vmem>>, vector<1x8x256xf32>
    %13 = vector.shape_cast %12 : vector<1x8x256xf32> to vector<8x256xf32>
    %14 = vector.shape_cast %11 : vector<8x256xf32> to vector<1x8x256xf32>
    tpu.vector_store %arg5[%c0_8, %c0_9, %c0_10], %14 {strides = array<i32>} : memref<1x8x256xf32, #tpu.memory_space<vmem>>, vector<1x8x256xf32>,
    return
  }
  func.func @transform_0(%arg0: i32, %arg1: i32) -> (i32, i32, i32) {
    %c0_i32 = arith.constant 0 : i32
    %c0_i32_0 = arith.constant 0 : i32
    return %arg0, %c0_i32, %arg1 : i32, i32, i32
  }
  func.func @transform_1(%arg0: i32, %arg1: i32) -> (i32, i32) {
    %c0_i32 = arith.constant 0 : i32
    %c0_i32_0 = arith.constant 0 : i32
    %c0_i32_1 = arith.constant 0 : i32
    return %c0_i32, %c0_i32_0 : i32, i32
  }
  func.func @transform_2(%arg0: i32, %arg1: i32) -> (i32, i32) {
    %c0_i32 = arith.constant 0 : i32
    %c0_i32_0 = arith.constant 0 : i32
    %c0_i32_1 = arith.constant 0 : i32
    return %c0_i32, %c0_i32_0 : i32, i32
  }
  func.func @transform_3(%arg0: i32, %arg1: i32) -> (i32, i32, i32) {
    %c0_i32 = arith.constant 0 : i32
    %c0_i32_0 = arith.constant 0 : i32
    return %arg0, %c0_i32, %arg1 : i32, i32, i32
  }
}

</mosaic_0001>

<bundles_post_ra>
// kernel: tpu_custom_call.1
= control target key start
LH: loop header
LB: loop body
LE: loop exit
PB: predicated region body
PF: predicated region fallthrough
CT: control target
= control target key end

     0   :  { %8 = vsyncpa [#allocation3], 0  ;;  %s689_s0 = inlined_call_operand.vmem [shape: f32[2,4,256], index: 0, kind: input, shape index: {}]   ;;  %s690_s1 = inlined_call_operand.vmem [shape: f32[8,4], index: 1, kind: input, shape index: {}]   ;;  %s691_s2 = inlined_call_operand.vmem [shape: f32[8,1], index: 2, kind: input, shape index: {}]   ;;  %s692_s3 = inlined_call_operand.hbm [shape: f32[2,8,256], index: 3, kind: output, shape index: {}]  }
   0x1   :  { %10 = vsyncpa [#allocation3 + $0x1], 0  ;;  %s571_s12 = smov 0   ;;  %s573_s13 = smov 0  }
   0x2   :  { %s575_s14 = smov 0   ;;  %s577_s15 = smov 0  }
   0x3   :  { %s579_s16 = smov 0   ;;  %s581_s17 = smov 0  }
   0x4 LB: > { %s391_s18 = sadd.s32 4294967295, %s546_s17   ;;  %s392_s19 = sadd.s32 4294967294, %s546_s17   ;;  %s546_s17 = sphi %s581_s17, %s16_s17   ;;  %s542_s16 = sphi %s579_s16, %s699_s16   ;;  %s538_s15 = sphi %s577_s15, %s698_s15   ;;  %s534_s14 = sphi %s575_s14, %s697_s14   ;;  %s530_s13 = sphi %s573_s13, %s696_s13   ;;  %s526_s12 = sphi %s571_s12, %s695_s12  }
   0x5   : > { %s28_s20 = sadd.s32 1, %s542_s16  ;;  %s107_s21 = sadd.s32 1, %s534_s14 }
   0x6   : > { %p30_p0 = scmp.ge.s32.totalorder %s28_s20, 2  ;;  %p117_p1 = scmp.ne.s32.totalorder %s534_s14, %s530_s13 }
   0x7   : > { %p118_p2 = scmp.eq.s32.totalorder %s391_s18, 1  ;;  %p123_p3 = scmp.ne.s32.totalorder %s530_s13, %s526_s12 }
   0x8   : > { %s701_s20 = smov (%p30_p0, %s28_s20), 0  ;;  %p124_p5 = scmp.eq.s32.totalorder %s392_s19, 1 }
   0x9   : > { %p611_p4 = por %p118_p2, %p117_p1  ;;  %s102_s23 = ssub.s32 %s542_s16, %s701_s20 }
   0xa   : > { %p395_p6 = scmp.ge.s32.totalorder %s546_s17, 1  ;;  %p105_p7 = scmp.eq.s32.totalorder %s102_s23, 0 }
   0xb   : > { %p618_p8 = por %p124_p5, %p123_p3  ;;  %p161_p9 = scmp.lt.s32.totalorder %s546_s17, 3 }
   0xc   : > { %s624_s25 = scalar_select %p105_p7, %s534_s14, %s107_s21  }
   0xd   : > { %p162_p10 = pnand %p395_p6, %p161_p9 }
   0xe   : > { %p190_p11 = scmp.lt.s32.totalorder (!%p162_p10), %s538_s15, 1  ;;  %v548_v0 = vmov (!%p162_p10), 0.0   ;;  %v549_v1 = vmov (!%p162_p10), 0   ;;  %v201_v2 = vld [vmem:[%s691_s2] sm:$0xff] (!%p162_p10)  ;;  %vm214_vm0 = vcmask (!%p162_p10), 1043456   ;;  %vm210_vm1 = vcmask (!%p162_p10), 31744  }
   0xf   : > { %165 = sbr.rel (%p162_p10) target bundleno = 263 (0x107), region = 32  ;;  %283 = vmatprep.mubr.f32.mxu0 (!%p162_p10), %v548_v0  ;;  %466 = vset.pattern.permute.xlu0 (!%p162_p10), %v549_v1  ;;  %v200_v5 = vld [vmem:[%s690_s1] sm:$0xff] (!%p162_p10)  ;;  %s186_s8 = sand.u32 (!%p162_p10), 1, %s530_s13  }
  0x10   : > { %205 = vperm.xlu0 (!%p162_p10), %466, %v201_v2   ;;  %s396_s9 = sshll.u32 (!%p162_p10), %s186_s8, 4  ;;  %s408_s10 = sshll.u32 (!%p162_p10), %s538_s15, 8 }
  0x11   : > { %s188_s11 = scalar_lea.vmem (!%p162_p10), [#allocation2], %s396_s9  ;;  %s642_s23 = scalar_lea.hbm (!%p162_p10), %s692_s3, %s408_s10 }
  0x12   : > { %s315_s18 = sshll.u32 (!%p162_p10), %s188_s11, 4  ;;  %s550_s27 = smov (!%p162_p10), [#allocation2]   ;;  %s644_s18 = int_to_ptr.vmem [resolvable:$true] %s315_s18 }
  0x13   : > { %s468_s26 = scalar_lea.vmem (!%p162_p10), %s644_s18, 256 }
  0x14   : > { %p469_p12 = scmp.ne.s32.totalorder (!%p162_p10), %s644_s18, %s468_s26 }
  0x16   : > { %s191_s28 = scalar_select %p190_p11, %s538_s15, 1 }
  0x17   : > { %s299_s15 = scalar_lea.sflag [#allocation3], %s186_s8  ;;  %p470_p13 = pnand %p469_p12, %p611_p4 }
  0x18   : > { %s407_s29 = sshll.u32 %s191_s28, 3  ;;  %s472_s28 = sshll.u32 %s550_s27, 4  ;;  %s473_s28 = int_to_ptr.vmem [resolvable:$false] %s472_s28 }
  0x19   : > { %s197_s5 = scalar_lea.vmem %s689_s0, %s407_s29  ;;  %p471_p0 = pneg %p470_p13 }
  0x1a   : > { %v202_v3 = vld [vmem:[%s197_s5] sm:$0xff]  ;;  %s474_s29 = scalar_lea.vmem %s473_s28, 512  ;;  %p475_p1 = scmp.lt.s32.totalorder %s644_s18, %s473_s28 }
  0x1b   : > { %v209_v4 = vcombine.high %v202_v3, %v202_v3  ;;  %p476_p2 = scmp.lt.s32.totalorder %s474_s29, %s468_s26 }
  0x1d   : > { %399 = vmatprep.subr.msk.mxu0 %vm214_vm0, %v209_v4  ;;  %p477_p3 = por %p476_p2, %p475_p1 }
  0x1e   : > { %400 = vmatpush1.msk.msra.mxu0 %vm214_vm0, %v202_v3 }
  0x1f   : > { %401 = vmatmul.mubr.msk.f32.vlgmr.msra.gmra.mrb[0].mxu0 %vm210_vm1, %v200_v5  ;;  %p478_p5 = pnand %p477_p3, %p471_p0 }
  0x8f   : > { %v206_v6 = vpop.permute.xlu0 %205 }
  0xf2   : > { %v285_v7 = vpop.f32.mrb[0].mxu0 }
  0xf3   : > { %v286_v8 = vadd.f32 %v285_v7, %v206_v6  ;;  %v287_v9 = vpop.f32.mrb[1].mxu0 }
  0xf4   : > { %v288_v10 = vadd.f32 %v287_v9, %v206_v6 }
  0xf5   : > { %vm290_vm2 = vcmp.gt.f32.partialorder %v286_v8, 0.0  ;;  %v292_v11 = vmul.f32 0.1, %v286_v8 }
  0xf6   : > { %vm291_vm3 = vcmp.gt.f32.partialorder %v288_v10, 0.0  ;;  %v293_v12 = vmul.f32 0.1, %v288_v10 }
  0xf7   : > { %v294_v13 = vsel %vm290_vm2, %v286_v8, %v292_v11 }
  0xf8   : > { %v295_v14 = vsel %vm291_vm3, %v288_v10, %v293_v12  ;;  %296 = vst [vmem:[%s188_s11] sm:$0xff] %v294_v13 }
  0xf9   : > { %297 = vst [vmem:[%s188_s11 + $0x8] sm:$0xff] %v295_v14 }
  0xfa   : > { %481 = shalt.err (!%p478_p5)
}
  0xfb   : > { %s482_s30 = scalar_lea.hbm %s642_s23, 256  ;;  %s486_s6 = scalar_lea.hbm %s692_s3, 512 }
  0xfc   : > { %p483_p6 = scmp.ne.s32.totalorder %s642_s23, %s482_s30  ;;  %p487_p10 = scmp.lt.u32.totalorder %s642_s23, %s692_s3 }
  0xfd   : > { %p488_p11 = scmp.lt.u32.totalorder %s486_s6, %s482_s30  ;;  %p490_p13 = scmp.lt.u32.totalorder %s482_s30, %s642_s23 }
  0xfe   : > { %p484_p7 = pnand %p483_p6, %p611_p4 }
  0xff   : > { %p489_p12 = por %p488_p11, %p487_p10 }
 0x100   : > { %p485_p9 = pneg %p484_p7 }
 0x101   : > { %p491_p0 = por %p490_p13, %p489_p12 }
 0x103   : > { %p492_p1 = pnand %p491_p0, %p485_p9 }
 0x105   : > { %495 = shalt.err (!%p492_p1)
}
 0x106   : > { %409 = dma.vmem_to_hbm [thread:$0]  (%p611_p4), %s644_s18, 256, %s642_s23, %s299_s15  }
 0x107 PF: > { %p415_p2 = scmp.ge.s32.totalorder %s546_s17, 2  ;;  %s327_s9 = sand.u32 1, %s526_s12  }
 0x108   : > { %s328_s10 = scalar_lea.sflag [#allocation3], %s327_s9 }
 0x109   : > { %p412_p3 = pnand %p415_p2, %p618_p8 }
 0x10b   : > { %521 = dma.done.wait (!%p412_p3), %s328_s10, 256  }
 0x10c   : > { %523 = vsyncadd (!%p412_p3), %s328_s10, 4294967040  ;;  %s16_s17 = sadd.s32 1, %s546_s17   ;;  %s695_s12 = smov %s530_s13 }
 0x10d   : > { %p13_p5 = scmp.ge.s32.totalorder %s16_s17, 4   ;;  %s696_s13 = smov %s534_s14 }
 0x10e   : > { %s697_s14 = smov %s624_s25  ;;  %s698_s15 = smov %s542_s16 }
 0x10f   : > { %s699_s16 = smov %s701_s20  ;;  %15 = sbr.rel (!%p13_p5) target bundleno = 4 (0x4), region = 67 }
 0x116   :  { %333 = vsyncpa [#allocation3], 1 }
 0x117   :  { %335 = vsyncpa [#allocation3 + $0x1], 1 }

</bundles_post_ra>
